<compile_context>
chip_gen: v5e
topology: v5e:2x2
jax: 0.10.0
libtpu: 0.0.40
codegen_flags: <defaults>
</compile_context>

<pallas_src>
import jax
import jax.numpy as jnp
from jax.experimental import pallas as pl
from jax.experimental.pallas import tpu as pltpu


def _make_fusion_attention_kernel(cin, cr, co):
    """Kernel over one (bt, C, HW) batch tile; channel counts are static."""

    def kernel(x_ref, p_ref, o_ref):
        # x_ref: (bt, Cin, HW) io-dtype; p_ref: (4, R, Cmax+1) f32; o_ref: (bt, Co, HW)
        x = x_ref[...].astype(jnp.float32)            # (bt, Cin, HW), lanes = HW
        p = p_ref[...]                                # tiny, hoisted once
        shift_col = p.shape[-1] - 1

        def conv1x1(inp, layer, n_out, n_in):
            # inp: (bt, n_in, L) f32 -> (bt, n_out, L) f32.
            # VPU outer-product FMAs: each term is ONE (1, n_out, 1) splat
            # broadcast over the whole batch tile (MXU would be <1% utilized
            # at these channel counts; see TODO below for large channels).
            w = p[layer]                              # (R, Cmax+1)
            out = w[:n_out, shift_col:shift_col + 1][None]          # (1, n_out, 1)
            for c in range(n_in):
                out = out + w[:n_out, c:c + 1][None] * inp[:, c:c + 1, :]
            return out

        # ---- fc2 branch: per-pixel conv -> ReLU -> conv (bulk of the work) ---
        h2 = jnp.maximum(conv1x1(x, 2, cr, cin), 0.0)                 # (bt, Cr, HW)
        x2 = conv1x1(h2, 3, co, cr)                                   # (bt, Co, HW)

        # ---- fc1 branch: GAP -> conv -> ReLU -> conv (tiny, (bt, C, 1)) ------
        gap = jnp.mean(x, axis=2, keepdims=True)                      # (bt, Cin, 1)
        h1 = jnp.maximum(conv1x1(gap, 0, cr, cin), 0.0)               # (bt, Cr, 1)
        x1 = conv1x1(h1, 1, co, cr)                                   # (bt, Co, 1)

        # ---- fuse + sigmoid; tanh form keeps the transcendental on the EUP ---
        z = x1 + x2                                   # x1 broadcasts over HW lanes
        o_ref[...] = (0.5 * jnp.tanh(0.5 * z) + 0.5).astype(o_ref.dtype)

    return kernel

# TODO(synk): for production channel counts (Cin/Co >= ~64) an MXU jnp.dot path
#             over HW tiles would beat the VPU outer products; not needed at C=4/8.


def fusion_attention_pallas(x_nchw, params, *, batch_tile=None, out_dtype=None):
    """x_nchw: (N, Cin, H, W) float32 or bfloat16.  Returns (N, Cout, H, W)."""
    N, Cin, H, W = x_nchw.shape
    HW = H * W
    Cr = params["w1a"].shape[0]
    Co = params["w1b"].shape[0]
    in_dtype = x_nchw.dtype
    out_dtype = in_dtype if out_dtype is None else out_dtype

    # Free, contiguous reshape (no transpose): NCHW -> (N, Cin, HW).
    x = x_nchw.reshape(N, Cin, HW)

    # ---- pack the 8 folded parameter arrays into ONE small f32 array -------
    # Layout: P[l, :n_out, :n_in] = W_l, P[l, :n_out, -1] = shift_l
    #   l=0: fc1 conv-a, l=1: fc1 conv-b, l=2: fc2 conv-a, l=3: fc2 conv-b.
    R = max(Cr, Co)
    Cmax = max(Cin, Cr)
    P = jnp.zeros((4, R, Cmax + 1), jnp.float32)

    def _put(Pk, idx, w, shift):
        Pk = Pk.at[idx, : w.shape[0], : w.shape[1]].set(w.astype(jnp.float32))
        return Pk.at[idx, : shift.shape[0], Cmax].set(shift[:, 0].astype(jnp.float32))

    P = _put(P, 0, params["w1a"], params["c1a"])
    P = _put(P, 1, params["w1b"], params["c1b"])
    P = _put(P, 2, params["w2a"], params["c2a"])
    P = _put(P, 3, params["w2b"], params["c2b"])

    # ---- padding-aware VMEM accounting & generation-aware budget ------------
    try:
        vmem_cap = int(pltpu.get_tpu_info().vmem_capacity_bytes)
    except Exception:
        vmem_cap = 64 << 20                       # conservative (v7x per-TC VMEM)

    in_isz = jnp.dtype(in_dtype).itemsize
    out_isz = jnp.dtype(out_dtype).itemsize
    hw_pad = -(-HW // 128) * 128

    def _rows_pad(rows, itemsize):                # sublane tile: 8 f32 / 16 bf16 rows
        mult = 8 * max(1, 4 // itemsize)
        return -(-rows // mult) * mult

    # double-buffered in/out blocks + f32 in-kernel temporaries, per image
    per_image_block = (_rows_pad(Cin, in_isz) * hw_pad * in_isz
                       + _rows_pad(Co, out_isz) * hw_pad * out_isz)
    per_image_temp = (_rows_pad(Cin, 4) + _rows_pad(Cr, 4)
                      + 2 * _rows_pad(Co, 4)) * hw_pad * 4
    per_image_vmem = 2 * per_image_block + per_image_temp
    param_bytes = 2 * 4 * _rows_pad(R, 4) * (-(-(Cmax + 1) // 128) * 128) * 4

    if batch_tile is None:
        vmem_budget = int(vmem_cap * 0.60)
        bt_vmem = max(1, (vmem_budget - param_bytes) // max(per_image_vmem, 1))
        # ~4 MiB of HBM input per step amortizes the ~0.35 us per-step overhead.
        per_image_hbm = Cin * HW * in_isz
        bt_target = max(1, (4 << 20) // max(per_image_hbm, 1))
        # Keep >= min(N, 4) grid steps so both v7x TensorCores stay pipelined.
        bt_steps = max(1, N // max(1, min(N, 4)))
        batch_tile = int(max(1, min(N, bt_vmem, bt_target, bt_steps)))

    # Pad the batch (instead of degrading to 1-image steps) if N % tile != 0.
    Np = -(-N // batch_tile) * batch_tile
    if Np != N:
        x = jnp.pad(x, ((0, Np - N), (0, 0), (0, 0)))
    grid = (Np // batch_tile,)

    vmem_est = batch_tile * per_image_vmem + param_bytes + (2 << 20)
    vmem_limit = int(min(max(vmem_est, 8 << 20), int(vmem_cap * 0.75)))

    cost = pl.CostEstimate(
        flops=int(2 * Np * HW * (Cin * Cr + Cr * Co) + 2 * Np * (Cin * Cr + Cr * Co)),
        transcendentals=int(Np * Co * HW),
        bytes_accessed=int(Np * HW * (Cin * in_isz + Co * out_isz) + P.size * 4),
    )

    kernel = _make_fusion_attention_kernel(Cin, Cr, Co)

    out = pl.pallas_call(
        kernel,
        out_shape=jax.ShapeDtypeStruct((Np, Co, HW), out_dtype),
        grid_spec=pl.GridSpec(
            grid=grid,
            in_specs=[
                pl.BlockSpec((batch_tile, Cin, HW), lambda n: (n, 0, 0)),
                pl.BlockSpec(P.shape, lambda n: (0, 0, 0)),
            ],
            out_specs=pl.BlockSpec((batch_tile, Co, HW), lambda n: (n, 0, 0)),
        ),
        compiler_params=pltpu.CompilerParams(
            dimension_semantics=("parallel",),
            vmem_limit_bytes=vmem_limit,
        ),
        cost_estimate=cost,
    )(x, P)

    if Np != N:
        out = out[:N]
    # Free reshape back to NCHW: (N, Co, HW) -> (N, Co, H, W).
    return out.reshape(N, Co, H, W)


def make_params(key, in_channels, out_channels, reduction_ratio=2):
    """Deterministic synthetic parameters matching the PyTorch module shapes.

    Conv2d 1x1 weights (out,in,1,1) are stored channel-major as (out, in).
    Eval-mode BatchNorm and the conv bias are folded into (w_folded, shift):
        y = w_folded @ x + shift,   w_folded = w * scale,
        shift = b * scale + (beta - mean * scale),  scale = gamma / sqrt(var + eps)
    """
    cr = out_channels // reduction_ratio
    eps = 1e-5
    keys = iter(jax.random.split(key, 32))

    def conv_bn(cin, cout):
        w = jax.random.normal(next(keys), (cout, cin), jnp.float32) * 0.1
        b = jax.random.normal(next(keys), (cout, 1), jnp.float32) * 0.05
        gamma = 1.0 + 0.1 * jax.random.normal(next(keys), (cout, 1), jnp.float32)
        beta = 0.1 * jax.random.normal(next(keys), (cout, 1), jnp.float32)
        mean = 0.1 * jax.random.normal(next(keys), (cout, 1), jnp.float32)
        var = jnp.abs(jax.random.normal(next(keys), (cout, 1), jnp.float32)) + 0.5
        scale = gamma / jnp.sqrt(var + eps)
        w_f = w * scale
        shift = b * scale + (beta - mean * scale)
        return w_f, shift

    p = {}
    p["w1a"], p["c1a"] = conv_bn(in_channels, cr)
    p["w1b"], p["c1b"] = conv_bn(cr, out_channels)
    p["w2a"], p["c2a"] = conv_bn(in_channels, cr)
    p["w2b"], p["c2b"] = conv_bn(cr, out_channels)
    return p


def fusion_attention_reference(x_nchw, params):
    """Pure-JAX reference (same math, no Pallas) for verification."""
    N, Cin, H, W = x_nchw.shape
    x = x_nchw.astype(jnp.float32).reshape(N, Cin, H * W)

    def branch(inp, wa, ca, wb, cb):
        h = jnp.maximum(jnp.einsum("oc,nch->noh", wa, inp) + ca, 0.0)
        return jnp.einsum("oc,nch->noh", wb, h) + cb

    gap = jnp.mean(x, axis=2, keepdims=True)          # (N, Cin, 1)
    x1 = branch(gap, params["w1a"], params["c1a"], params["w1b"], params["c1b"])
    x2 = branch(x, params["w2a"], params["c2a"], params["w2b"], params["c2b"])
    out = jax.nn.sigmoid(x1 + x2)                     # (N, Co, HW)
    return out.reshape(N, -1, H, W)


if __name__ == "__main__":
    N, Cin, H, W = 2, 4, 16, 16
    Cout, reduction = 8, 2

    key = jax.random.PRNGKey(0)
    kx, kp = jax.random.split(key)
    x = jax.random.normal(kx, (N, Cin, H, W), jnp.float32)
    params = make_params(kp, Cin, Cout, reduction)

    ref = fusion_attention_reference(x, params)

    # f32 I/O path (strict check).
    out = fusion_attention_pallas(x, params)
    out = jax.block_until_ready(out)
    assert out.shape == (N, Cout, H, W), out.shape
    assert jnp.allclose(out, ref, atol=1e-5, rtol=1e-5), "f32 mismatch vs reference"

    # bf16-at-HBM path (halves HBM traffic; math stays f32 in-kernel).
    out_bf16 = fusion_attention_pallas(x.astype(jnp.bfloat16), params)
    out_bf16 = jax.block_until_ready(out_bf16)
    assert out_bf16.dtype == jnp.bfloat16
    assert jnp.allclose(out_bf16.astype(jnp.float32), ref, atol=3e-2, rtol=3e-2), \
        "bf16 mismatch vs reference"

    print("KERNEL_OK")
</pallas_src>

<mosaic_0001>
module attributes {stable_mosaic.version = 11 : i64} {
  func.func @kernel(%arg0: i32, %arg1: memref<1x4x256xf32, #tpu.memory_space<vmem>>, %arg2: memref<4x8x5xf32, #tpu.memory_space<vmem>>, %arg3: memref<1x8x256xf32, #tpu.memory_space<vmem>>) attributes {dimension_semantics = [#tpu.dimension_semantics<parallel>], iteration_bounds = array<i64: 2>, scalar_prefetch = 0 : i64, scratch_operands = 0 : i64, tpu.core_type = #tpu.core_type<tc>, window_params = [{transform_indices = @transform_0, window_bounds = array<i64: 1, 4, 256>}, {pipeline_mode = #tpu.pipeline_mode<synchronous>, transform_indices = @transform_1, window_bounds = array<i64: 4, 8, 5>}, {transform_indices = @transform_2, window_bounds = array<i64: 1, 8, 256>}]} {
    %c0 = arith.constant 0 : index
    %c0_0 = arith.constant 0 : index
    %c0_1 = arith.constant 0 : index
    %0 = vector.load %arg1[%c0, %c0_0, %c0_1] : memref<1x4x256xf32, #tpu.memory_space<vmem>>, vector<1x4x256xf32>
    %c0_2 = arith.constant 0 : index
    %c0_3 = arith.constant 0 : index
    %c0_4 = arith.constant 0 : index
    %1 = vector.load %arg2[%c0_2, %c0_3, %c0_4] : memref<4x8x5xf32, #tpu.memory_space<vmem>>, vector<4x8x5xf32>
    %2 = vector.extract_strided_slice %1 {offsets = [2, 0, 0], sizes = [1, 8, 5], strides = [1, 1, 1]} : vector<4x8x5xf32> to vector<1x8x5xf32>
    %3 = vector.shape_cast %2 : vector<1x8x5xf32> to vector<8x5xf32>
    %4 = vector.extract_strided_slice %3 {offsets = [0, 4], sizes = [4, 1], strides = [1, 1]} : vector<8x5xf32> to vector<4x1xf32>
    %5 = vector.shape_cast %4 : vector<4x1xf32> to vector<1x4x1xf32>
    %6 = vector.extract_strided_slice %3 {offsets = [0, 0], sizes = [4, 1], strides = [1, 1]} : vector<8x5xf32> to vector<4x1xf32>
    %7 = vector.shape_cast %6 : vector<4x1xf32> to vector<1x4x1xf32>
    %8 = vector.extract_strided_slice %0 {offsets = [0, 0, 0], sizes = [1, 1, 256], strides = [1, 1, 1]} : vector<1x4x256xf32> to vector<1x1x256xf32>
    %9 = vector.broadcast %7 : vector<1x4x1xf32> to vector<1x4x256xf32>
    %10 = vector.broadcast %8 : vector<1x1x256xf32> to vector<1x4x256xf32>
    %11 = arith.mulf %9, %10 : vector<1x4x256xf32>
    %12 = vector.broadcast %5 : vector<1x4x1xf32> to vector<1x4x256xf32>
    %13 = arith.addf %12, %11 : vector<1x4x256xf32>
    %14 = vector.extract_strided_slice %3 {offsets = [0, 1], sizes = [4, 1], strides = [1, 1]} : vector<8x5xf32> to vector<4x1xf32>
    %15 = vector.shape_cast %14 : vector<4x1xf32> to vector<1x4x1xf32>
    %16 = vector.extract_strided_slice %0 {offsets = [0, 1, 0], sizes = [1, 1, 256], strides = [1, 1, 1]} : vector<1x4x256xf32> to vector<1x1x256xf32>
    %17 = vector.broadcast %15 : vector<1x4x1xf32> to vector<1x4x256xf32>
    %18 = vector.broadcast %16 : vector<1x1x256xf32> to vector<1x4x256xf32>
    %19 = arith.mulf %17, %18 : vector<1x4x256xf32>
    %20 = arith.addf %13, %19 : vector<1x4x256xf32>
    %21 = vector.extract_strided_slice %3 {offsets = [0, 2], sizes = [4, 1], strides = [1, 1]} : vector<8x5xf32> to vector<4x1xf32>
    %22 = vector.shape_cast %21 : vector<4x1xf32> to vector<1x4x1xf32>
    %23 = vector.extract_strided_slice %0 {offsets = [0, 2, 0], sizes = [1, 1, 256], strides = [1, 1, 1]} : vector<1x4x256xf32> to vector<1x1x256xf32>
    %24 = vector.broadcast %22 : vector<1x4x1xf32> to vector<1x4x256xf32>
    %25 = vector.broadcast %23 : vector<1x1x256xf32> to vector<1x4x256xf32>
    %26 = arith.mulf %24, %25 : vector<1x4x256xf32>
    %27 = arith.addf %20, %26 : vector<1x4x256xf32>
    %28 = vector.extract_strided_slice %3 {offsets = [0, 3], sizes = [4, 1], strides = [1, 1]} : vector<8x5xf32> to vector<4x1xf32>
    %29 = vector.shape_cast %28 : vector<4x1xf32> to vector<1x4x1xf32>
    %30 = vector.extract_strided_slice %0 {offsets = [0, 3, 0], sizes = [1, 1, 256], strides = [1, 1, 1]} : vector<1x4x256xf32> to vector<1x1x256xf32>
    %31 = vector.broadcast %29 : vector<1x4x1xf32> to vector<1x4x256xf32>
    %32 = vector.broadcast %30 : vector<1x1x256xf32> to vector<1x4x256xf32>
    %33 = arith.mulf %31, %32 : vector<1x4x256xf32>
    %34 = arith.addf %27, %33 : vector<1x4x256xf32>
    %cst = arith.constant 0.000000e+00 : f32
    %35 = vector.broadcast %cst : f32 to vector<1x4x256xf32>
    %36 = arith.maximumf %34, %35 : vector<1x4x256xf32>
    %37 = vector.extract_strided_slice %1 {offsets = [3, 0, 0], sizes = [1, 8, 5], strides = [1, 1, 1]} : vector<4x8x5xf32> to vector<1x8x5xf32>
    %38 = vector.shape_cast %37 : vector<1x8x5xf32> to vector<8x5xf32>
    %39 = vector.extract_strided_slice %38 {offsets = [0, 4], sizes = [8, 1], strides = [1, 1]} : vector<8x5xf32> to vector<8x1xf32>
    %40 = vector.shape_cast %39 : vector<8x1xf32> to vector<1x8x1xf32>
    %41 = vector.extract_strided_slice %38 {offsets = [0, 0], sizes = [8, 1], strides = [1, 1]} : vector<8x5xf32> to vector<8x1xf32>
    %42 = vector.shape_cast %41 : vector<8x1xf32> to vector<1x8x1xf32>
    %43 = vector.extract_strided_slice %36 {offsets = [0, 0, 0], sizes = [1, 1, 256], strides = [1, 1, 1]} : vector<1x4x256xf32> to vector<1x1x256xf32>
    %44 = vector.broadcast %42 : vector<1x8x1xf32> to vector<1x8x256xf32>
    %45 = vector.broadcast %43 : vector<1x1x256xf32> to vector<1x8x256xf32>
    %46 = arith.mulf %44, %45 : vector<1x8x256xf32>
    %47 = vector.broadcast %40 : vector<1x8x1xf32> to vector<1x8x256xf32>
    %48 = arith.addf %47, %46 : vector<1x8x256xf32>
    %49 = vector.extract_strided_slice %38 {offsets = [0, 1], sizes = [8, 1], strides = [1, 1]} : vector<8x5xf32> to vector<8x1xf32>
    %50 = vector.shape_cast %49 : vector<8x1xf32> to vector<1x8x1xf32>
    %51 = vector.extract_strided_slice %36 {offsets = [0, 1, 0], sizes = [1, 1, 256], strides = [1, 1, 1]} : vector<1x4x256xf32> to vector<1x1x256xf32>
    %52 = vector.broadcast %50 : vector<1x8x1xf32> to vector<1x8x256xf32>
    %53 = vector.broadcast %51 : vector<1x1x256xf32> to vector<1x8x256xf32>
    %54 = arith.mulf %52, %53 : vector<1x8x256xf32>
    %55 = arith.addf %48, %54 : vector<1x8x256xf32>
    %56 = vector.extract_strided_slice %38 {offsets = [0, 2], sizes = [8, 1], strides = [1, 1]} : vector<8x5xf32> to vector<8x1xf32>
    %57 = vector.shape_cast %56 : vector<8x1xf32> to vector<1x8x1xf32>
    %58 = vector.extract_strided_slice %36 {offsets = [0, 2, 0], sizes = [1, 1, 256], strides = [1, 1, 1]} : vector<1x4x256xf32> to vector<1x1x256xf32>
    %59 = vector.broadcast %57 : vector<1x8x1xf32> to vector<1x8x256xf32>
    %60 = vector.broadcast %58 : vector<1x1x256xf32> to vector<1x8x256xf32>
    %61 = arith.mulf %59, %60 : vector<1x8x256xf32>
    %62 = arith.addf %55, %61 : vector<1x8x256xf32>
    %63 = vector.extract_strided_slice %38 {offsets = [0, 3], sizes = [8, 1], strides = [1, 1]} : vector<8x5xf32> to vector<8x1xf32>
    %64 = vector.shape_cast %63 : vector<8x1xf32> to vector<1x8x1xf32>
    %65 = vector.extract_strided_slice %36 {offsets = [0, 3, 0], sizes = [1, 1, 256], strides = [1, 1, 1]} : vector<1x4x256xf32> to vector<1x1x256xf32>
    %66 = vector.broadcast %64 : vector<1x8x1xf32> to vector<1x8x256xf32>
    %67 = vector.broadcast %65 : vector<1x1x256xf32> to vector<1x8x256xf32>
    %68 = arith.mulf %66, %67 : vector<1x8x256xf32>
    %69 = arith.addf %62, %68 : vector<1x8x256xf32>
    %cst_5 = arith.constant dense<0.000000e+00> : vector<1x4xf32>
    %70 = vector.multi_reduction <add>, %0, %cst_5 [2] : vector<1x4x256xf32> to vector<1x4xf32>
    %71 = vector.shape_cast %70 : vector<1x4xf32> to vector<1x4x1xf32>
    %cst_6 = arith.constant 2.560000e+02 : f32
    %72 = vector.broadcast %cst_6 : f32 to vector<1x4x1xf32>
    %73 = arith.divf %71, %72 : vector<1x4x1xf32>
    %74 = vector.extract_strided_slice %1 {offsets = [0, 0, 0], sizes = [1, 8, 5], strides = [1, 1, 1]} : vector<4x8x5xf32> to vector<1x8x5xf32>
    %75 = vector.shape_cast %74 : vector<1x8x5xf32> to vector<8x5xf32>
    %76 = vector.extract_strided_slice %75 {offsets = [0, 4], sizes = [4, 1], strides = [1, 1]} : vector<8x5xf32> to vector<4x1xf32>
    %77 = vector.shape_cast %76 : vector<4x1xf32> to vector<1x4x1xf32>
    %78 = vector.extract_strided_slice %75 {offsets = [0, 0], sizes = [4, 1], strides = [1, 1]} : vector<8x5xf32> to vector<4x1xf32>
    %79 = vector.shape_cast %78 : vector<4x1xf32> to vector<1x4x1xf32>
    %80 = vector.extract_strided_slice %73 {offsets = [0, 0, 0], sizes = [1, 1, 1], strides = [1, 1, 1]} : vector<1x4x1xf32> to vector<1x1x1xf32>
    %81 = vector.broadcast %80 : vector<1x1x1xf32> to vector<1x4x1xf32>
    %82 = arith.mulf %79, %81 : vector<1x4x1xf32>
    %83 = arith.addf %77, %82 : vector<1x4x1xf32>
    %84 = vector.extract_strided_slice %75 {offsets = [0, 1], sizes = [4, 1], strides = [1, 1]} : vector<8x5xf32> to vector<4x1xf32>
    %85 = vector.shape_cast %84 : vector<4x1xf32> to vector<1x4x1xf32>
    %86 = vector.extract_strided_slice %73 {offsets = [0, 1, 0], sizes = [1, 1, 1], strides = [1, 1, 1]} : vector<1x4x1xf32> to vector<1x1x1xf32>
    %87 = vector.broadcast %86 : vector<1x1x1xf32> to vector<1x4x1xf32>
    %88 = arith.mulf %85, %87 : vector<1x4x1xf32>
    %89 = arith.addf %83, %88 : vector<1x4x1xf32>
    %90 = vector.extract_strided_slice %75 {offsets = [0, 2], sizes = [4, 1], strides = [1, 1]} : vector<8x5xf32> to vector<4x1xf32>
    %91 = vector.shape_cast %90 : vector<4x1xf32> to vector<1x4x1xf32>
    %92 = vector.extract_strided_slice %73 {offsets = [0, 2, 0], sizes = [1, 1, 1], strides = [1, 1, 1]} : vector<1x4x1xf32> to vector<1x1x1xf32>
    %93 = vector.broadcast %92 : vector<1x1x1xf32> to vector<1x4x1xf32>
    %94 = arith.mulf %91, %93 : vector<1x4x1xf32>
    %95 = arith.addf %89, %94 : vector<1x4x1xf32>
    %96 = vector.extract_strided_slice %75 {offsets = [0, 3], sizes = [4, 1], strides = [1, 1]} : vector<8x5xf32> to vector<4x1xf32>
    %97 = vector.shape_cast %96 : vector<4x1xf32> to vector<1x4x1xf32>
    %98 = vector.extract_strided_slice %73 {offsets = [0, 3, 0], sizes = [1, 1, 1], strides = [1, 1, 1]} : vector<1x4x1xf32> to vector<1x1x1xf32>
    %99 = vector.broadcast %98 : vector<1x1x1xf32> to vector<1x4x1xf32>
    %100 = arith.mulf %97, %99 : vector<1x4x1xf32>
    %101 = arith.addf %95, %100 : vector<1x4x1xf32>
    %cst_7 = arith.constant 0.000000e+00 : f32
    %102 = vector.broadcast %cst_7 : f32 to vector<1x4x1xf32>
    %103 = arith.maximumf %101, %102 : vector<1x4x1xf32>
    %104 = vector.extract_strided_slice %1 {offsets = [1, 0, 0], sizes = [1, 8, 5], strides = [1, 1, 1]} : vector<4x8x5xf32> to vector<1x8x5xf32>
    %105 = vector.shape_cast %104 : vector<1x8x5xf32> to vector<8x5xf32>
    %106 = vector.extract_strided_slice %105 {offsets = [0, 4], sizes = [8, 1], strides = [1, 1]} : vector<8x5xf32> to vector<8x1xf32>
    %107 = vector.shape_cast %106 : vector<8x1xf32> to vector<1x8x1xf32>
    %108 = vector.extract_strided_slice %105 {offsets = [0, 0], sizes = [8, 1], strides = [1, 1]} : vector<8x5xf32> to vector<8x1xf32>
    %109 = vector.shape_cast %108 : vector<8x1xf32> to vector<1x8x1xf32>
    %110 = vector.extract_strided_slice %103 {offsets = [0, 0, 0], sizes = [1, 1, 1], strides = [1, 1, 1]} : vector<1x4x1xf32> to vector<1x1x1xf32>
    %111 = vector.broadcast %110 : vector<1x1x1xf32> to vector<1x8x1xf32>
    %112 = arith.mulf %109, %111 : vector<1x8x1xf32>
    %113 = arith.addf %107, %112 : vector<1x8x1xf32>
    %114 = vector.extract_strided_slice %105 {offsets = [0, 1], sizes = [8, 1], strides = [1, 1]} : vector<8x5xf32> to vector<8x1xf32>
    %115 = vector.shape_cast %114 : vector<8x1xf32> to vector<1x8x1xf32>
    %116 = vector.extract_strided_slice %103 {offsets = [0, 1, 0], sizes = [1, 1, 1], strides = [1, 1, 1]} : vector<1x4x1xf32> to vector<1x1x1xf32>
    %117 = vector.broadcast %116 : vector<1x1x1xf32> to vector<1x8x1xf32>
    %118 = arith.mulf %115, %117 : vector<1x8x1xf32>
    %119 = arith.addf %113, %118 : vector<1x8x1xf32>
    %120 = vector.extract_strided_slice %105 {offsets = [0, 2], sizes = [8, 1], strides = [1, 1]} : vector<8x5xf32> to vector<8x1xf32>
    %121 = vector.shape_cast %120 : vector<8x1xf32> to vector<1x8x1xf32>
    %122 = vector.extract_strided_slice %103 {offsets = [0, 2, 0], sizes = [1, 1, 1], strides = [1, 1, 1]} : vector<1x4x1xf32> to vector<1x1x1xf32>
    %123 = vector.broadcast %122 : vector<1x1x1xf32> to vector<1x8x1xf32>
    %124 = arith.mulf %121, %123 : vector<1x8x1xf32>
    %125 = arith.addf %119, %124 : vector<1x8x1xf32>
    %126 = vector.extract_strided_slice %105 {offsets = [0, 3], sizes = [8, 1], strides = [1, 1]} : vector<8x5xf32> to vector<8x1xf32>
    %127 = vector.shape_cast %126 : vector<8x1xf32> to vector<1x8x1xf32>
    %128 = vector.extract_strided_slice %103 {offsets = [0, 3, 0], sizes = [1, 1, 1], strides = [1, 1, 1]} : vector<1x4x1xf32> to vector<1x1x1xf32>
    %129 = vector.broadcast %128 : vector<1x1x1xf32> to vector<1x8x1xf32>
    %130 = arith.mulf %127, %129 : vector<1x8x1xf32>
    %131 = arith.addf %125, %130 : vector<1x8x1xf32>
    %132 = vector.broadcast %131 : vector<1x8x1xf32> to vector<1x8x256xf32>
    %133 = arith.addf %132, %69 : vector<1x8x256xf32>
    %cst_8 = arith.constant 5.000000e-01 : f32
    %134 = vector.broadcast %cst_8 : f32 to vector<1x8x256xf32>
    %135 = arith.mulf %134, %133 : vector<1x8x256xf32>
    %136 = math.tanh %135 : vector<1x8x256xf32>
    %cst_9 = arith.constant 5.000000e-01 : f32
    %137 = vector.broadcast %cst_9 : f32 to vector<1x8x256xf32>
    %138 = arith.mulf %137, %136 : vector<1x8x256xf32>
    %cst_10 = arith.constant 5.000000e-01 : f32
    %139 = vector.broadcast %cst_10 : f32 to vector<1x8x256xf32>
    %140 = arith.addf %138, %139 : vector<1x8x256xf32>
    %c0_11 = arith.constant 0 : index
    %c0_12 = arith.constant 0 : index
    %c0_13 = arith.constant 0 : index
    %141 = vector.load %arg3[%c0_11, %c0_12, %c0_13] : memref<1x8x256xf32, #tpu.memory_space<vmem>>, vector<1x8x256xf32>
    tpu.vector_store %arg3[%c0_11, %c0_12, %c0_13], %140 {strides = array<i32>} : memref<1x8x256xf32, #tpu.memory_space<vmem>>, vector<1x8x256xf32>,
    return
  }
  func.func @transform_0(%arg0: i32) -> (i32, i32, i32) {
    %c0_i32 = arith.constant 0 : i32
    %c0_i32_0 = arith.constant 0 : i32
    %c0_i32_1 = arith.constant 0 : i32
    return %arg0, %c0_i32, %c0_i32_0 : i32, i32, i32
  }
  func.func @transform_1(%arg0: i32) -> (i32, i32, i32) {
    %c0_i32 = arith.constant 0 : i32
    %c0_i32_0 = arith.constant 0 : i32
    %c0_i32_1 = arith.constant 0 : i32
    %c0_i32_2 = arith.constant 0 : i32
    return %c0_i32, %c0_i32_0, %c0_i32_1 : i32, i32, i32
  }
  func.func @transform_2(%arg0: i32) -> (i32, i32, i32) {
    %c0_i32 = arith.constant 0 : i32
    %c0_i32_0 = arith.constant 0 : i32
    %c0_i32_1 = arith.constant 0 : i32
    return %arg0, %c0_i32, %c0_i32_0 : i32, i32, i32
  }
}

</mosaic_0001>

<bundles_post_ra>
// kernel: tpu_custom_call.1
= control target key start
LH: loop header
LB: loop body
LE: loop exit
PB: predicated region body
PF: predicated region fallthrough
CT: control target
= control target key end

     0   :  { %7 = vsyncpa [#allocation3], 0  ;;  %s732_s0 = inlined_call_operand.vmem [shape: f32[2,4,256], index: 0, kind: input, shape index: {}]   ;;  %s733_s1 = inlined_call_operand.vmem [shape: f32[4,8,5], index: 1, kind: input, shape index: {}]   ;;  %s734_s2 = inlined_call_operand.hbm [shape: f32[2,8,256], index: 2, kind: output, shape index: {}]  }
   0x1   :  { %9 = vsyncpa [#allocation3 + $0x1], 0  ;;  %s618_s9 = smov 0   ;;  %s620_s10 = smov 0  }
   0x2   :  { %s622_s11 = smov 0   ;;  %s624_s12 = smov 0  }
   0x3 LB: > { %s639_s13 = sadd.s32 4294967295, %s587_s12   ;;  %s441_s14 = sadd.s32 4294967294, %s587_s12   ;;  %s587_s12 = sphi %s624_s12, %s740_s12   ;;  %s583_s11 = sphi %s622_s11, %s739_s11   ;;  %s579_s10 = sphi %s620_s10, %s738_s10   ;;  %s575_s9 = sphi %s618_s9, %s737_s9  }
   0x4   : > { %s643_s15 = sadd.s32 1, %s587_s12   ;;  %s69_s16 = sadd.s32 1, %s583_s11 }
   0x5   : > { %s66_s17 = ssub.s32 %s587_s12, %s643_s15  ;;  %p79_p0 = scmp.ne.s32.totalorder %s583_s11, %s579_s10 }
   0x6   : > { %p67_p1 = scmp.eq.s32.totalorder %s66_s17, 0  ;;  %p80_p2 = scmp.eq.s32.totalorder %s639_s13, 1 }
   0x7   : > { %p85_p3 = scmp.ne.s32.totalorder %s579_s10, %s575_s9  ;;  %p86_p4 = scmp.eq.s32.totalorder %s441_s14, 1 }
   0x8   : > { %s654_s18 = scalar_select %p67_p1, %s583_s11, %s69_s16  }
   0x9   : > { %p656_p5 = por %p80_p2, %p79_p0  ;;  %p660_p6 = por %p86_p4, %p85_p3 }
   0xa   : > { %p444_p7 = scmp.ge.s32.totalorder %s587_s12, 1  ;;  %p115_p8 = scmp.lt.s32.totalorder %s587_s12, 3 }
   0xc   : > { %p116_p9 = pnand %p444_p7, %p115_p8 }
   0xd   : > { %p137_p10 = scmp.lt.s32.totalorder (!%p116_p9), %s639_s13, 1  ;;  %s590_s28 = smov (!%p116_p9), 1  }
   0xe   : > { %119 = sbr.rel (%p116_p9) target bundleno = 636 (0x27c), region = 28  ;;  %s591_s29 = smov (!%p116_p9), 3  }
   0xf   : > { %s592_s30 = smov (!%p116_p9), 4   ;;  %s593_s3 = smov (!%p116_p9), 2  }
  0x10   : > { %s594_s4 = smov (!%p116_p9), 125   ;;  %s595_s5 = smov (!%p116_p9), 124  }
  0x11   : > { %s596_s6 = smov (!%p116_p9), 127   ;;  %s597_s7 = smov (!%p116_p9), 126  }
  0x12   : > { %s134_s23 = sand.u32 (!%p116_p9), 1, %s579_s10   ;;  %s545_s8 = scalar_lea.hbm (!%p116_p9), %s734_s2, 32 }
  0x13   : > { %s138_s21 = scalar_select %p137_p10, %s639_s13, 1  ;;  %vm261_vm0 = vcmask 1043456   ;;  %v589_v6 = vmov 256.0   ;;  %v143_v15 = vld [vmem:[%s733_s1] sm:$0xff]  ;;  %v144_v37 = vld [vmem:[%s733_s1 + $0x8] sm:$0xff]  ;;  %v598_v40 = vmov 4  }
  0x14   : > { %519 = vrcp.f32 %v589_v6  ;;  %509 = vset.pattern.permute.xlu1 %v598_v40  ;;  %v599_v41 = vmov 0   ;;  %v145_v44 = vld [vmem:[%s733_s1 + $0x10] sm:$0xff]  ;;  %v600_v47 = vmov 2   ;;  %v146_v50 = vld [vmem:[%s733_s1 + $0x18] sm:$0xff]  ;;  %v601_v51 = vmov 1   ;;  %s445_s24 = sshll.u32 %s134_s23, 4 }
  0x15   : > { %s453_s22 = sshll.u32 %s138_s21, 3  ;;  %508 = vset.pattern.permute.xlu0 %v599_v41  ;;  %510 = vset.pattern.permute.xlu2 %v601_v51  ;;  %v602_v52 = vmov 3  }
  0x16   : > { %s141_s25 = scalar_lea.vmem %s732_s0, %s453_s22 }
  0x17   : > { %v671_v0 = vld [vmem:[%s141_s25] sm:$0xff]  ;;  %s454_s25 = sshll.u32 %s639_s13, 4 }
  0x18   : > { %256 = vst [vmem:[#allocation1] ss:$2 sm:$0xff] %v671_v0  ;;  %v153_v61 = vperm.slane %v671_v0, 0  ;;  %v154_v62 = vperm.slane %v671_v0, 4 }
  0x1a   : > { %v520_v7 = vpop.eup %519 }
  0x1b   : > { %v268_v8 = vmul.f32 256.0, %v520_v7  ;;  %vm272_vm1 = vweird.f32 %v520_v7 }
  0x1d   : > { %v269_v9 = vsub.f32 1.0, %v268_v8  ;;  %v186_v8 = vperm.slane %v671_v0, 6 }
  0x1f   : > { %v257_v1 = vld.sshfl [vmem:[#allocation1] sm:$0xff pattern:$0x75316420]  ;;  %v258_v2 = vld.sshfl [vmem:[#allocation1 + $0x8] sm:$0xff pattern:$0x75316420]  ;;  %v270_v10 = vmul.f32 %v520_v7, %v269_v9 }
  0x20   : > { %v262_v3 = vsel %vm261_vm0, %v257_v1, 0.0  ;;  %v263_v4 = vsel %vm261_vm0, %v258_v2, 0.0  ;;  %v171_v1 = vperm.slane %v671_v0, 1  ;;  %v172_v2 = vperm.slane %v671_v0, 5 }
  0x21   : > { %v264_v5 = vadd.f32 %v263_v4, %v262_v3  ;;  %v271_v11 = vadd.f32 %v520_v7, %v270_v10  ;;  %v157_v3 = vperm.slane %v153_v61, 0  ;;  %v158_v4 = vperm.slane %v154_v62, 0 }
  0x22   : > { %v175_v9 = vperm.slane %v171_v1, 1  ;;  %v176_v10 = vperm.slane %v172_v2, 1 }
  0x23   : > { %265 = vadd.xlane.f32.xlu0 %v264_v5  ;;  %v273_v12 = vsel %vm272_vm1, %v520_v7, %v271_v11  ;;  %v185_v7 = vperm.slane %v671_v0, 2 }
  0x96   : > { %v266_v13 = vpop.xlane.xlu0 %265 }
  0x97   : > { %v274_v14 = vmul.f32 %v273_v12, %v266_v13  ;;  %v189_v13 = vperm.slane %v185_v7, 2 }
  0x99   : > { %v296_v16 = vperm.slane %v274_v14, 3  ;;  %v282_v17 = vperm.slane %v274_v14, 1  ;;  %v275_v18 = vperm.slane %v274_v14, 0  ;;  %v289_v22 = vperm.slane %v274_v14, 2 }
  0x9a   : > { %v190_v14 = vperm.slane %v186_v8, 2 }
  0x9b   : > { %v297_v19 = vmul.f32 %v296_v16, %v143_v15  ;;  %v283_v20 = vmul.f32 %v282_v17, %v143_v15  ;;  %v276_v21 = vmul.f32 %v275_v18, %v143_v15  ;;  %v290_v23 = vmul.f32 %v289_v22, %v143_v15 }
  0x9c   : > { %v200_v16 = vperm.slane %v671_v0, 7 }
  0x9d   : > { %299 = vrot.lane.b32.xlu2 %v297_v19, %s590_s28  ;;  %285 = vrot.lane.b32.xlu1 %v283_v20, %s591_s29 }
  0x9e   : > { %278 = vrot.lane.b32.xlu0 %v276_v21, %s592_s30 }
  0xa5   : > { %292 = vrot.lane.b32.xlu1 %v290_v23, %s593_s3  ;;  %v204_v23 = vperm.slane %v200_v16, 3 }
  0xf7   : > { %v300_v30 = vpop.permute.xlu2 %299 }
 0x10f   : > { %v286_v24 = vpop.permute.xlu1 %285 }
 0x110   : > { %v279_v25 = vpop.permute.xlu0 %278 }
 0x111   : > { %v281_v26 = vadd.f32 %v279_v25, %v143_v15  ;;  %v199_v15 = vperm.slane %v671_v0, 3 }
 0x113   : > { %v288_v27 = vadd.f32 %v286_v24, %v281_v26  ;;  %v203_v22 = vperm.slane %v199_v15, 3 }
 0x117   : > { %v293_v28 = vpop.permute.xlu1 %292 }
 0x118   : > { %v295_v29 = vadd.f32 %v293_v28, %v288_v27 }
 0x11a   : > { %v302_v31 = vadd.f32 %v300_v30, %v295_v29 }
 0x11c   : > { %v303_v32 = vmax.f32 %v302_v31, 0.0 }
 0x11e   : > { %v315_v33 = vperm.slane %v303_v32, 1  ;;  %v304_v34 = vperm.slane %v303_v32, 0  ;;  %v337_v35 = vperm.slane %v303_v32, 3  ;;  %v326_v36 = vperm.slane %v303_v32, 2 }
 0x120   : > { %317 = vrot.lane.b32.xlu1 %v315_v33, %s594_s4  ;;  %306 = vrot.lane.b32.xlu2 %v304_v34, %s595_s5  ;;  %s366_s4 = scalar_lea.sflag [#allocation3], %s134_s23 }
 0x128   : > { %339 = vrot.lane.b32.xlu1 %v337_v35, %s596_s6  ;;  %328 = vrot.lane.b32.xlu2 %v326_v36, %s597_s7 }
 0x17a   : > { %v307_v38 = vpop.permute.xlu2 %306 }
 0x17b   : > { %v309_v39 = vmul.f32 %v307_v38, %v144_v37 }
 0x17d   : > { %311 = vrot.lane.b32.xlu2 %v309_v39, %s592_s30 }
 0x182   : > { %v329_v42 = vpop.permute.xlu2 %328 }
 0x183   : > { %v331_v43 = vmul.f32 %v329_v42, %v144_v37 }
 0x185   : > { %333 = vrot.lane.b32.xlu1 %v331_v43, %s593_s3 }
 0x18d   : > { %162 = vperm.xlu1 %509, %v145_v44  }
 0x192   : > { %v318_v45 = vpop.permute.xlu1 %317 }
 0x193   : > { %v320_v46 = vmul.f32 %v318_v45, %v144_v37 }
 0x195   : > { %322 = vrot.lane.b32.xlu0 %v320_v46, %s591_s29  ;;  %511 = vset.pattern.permute.xlu1 %v600_v47  ;;  %s136_s29 = scalar_lea.vmem [#allocation2], %s445_s24 }
 0x196   : > { %182 = vperm.xlu1 %511, %v145_v44   ;;  %s379_s30 = sshll.u32 %s136_s29, 4  ;;  %s380_s30 = int_to_ptr.vmem [resolvable:$true] %s379_s30 }
 0x19a   : > { %v340_v48 = vpop.permute.xlu1 %339 }
 0x19b   : > { %v342_v49 = vmul.f32 %v340_v48, %v144_v37 }
 0x19d   : > { %344 = vrot.lane.b32.xlu2 %v342_v49, %s590_s28  ;;  %149 = vperm.xlu0 %508, %v145_v44   ;;  %s377_s28 = scalar_lea.hbm %s734_s2, %s454_s25 }
 0x19e   : > { %513 = vset.pattern.permute.xlu1 %v598_v40  ;;  %s381_s3 = sshll.u32 %s377_s28, 4  ;;  %s382_s3 = int_to_ptr.hbm [resolvable:$true] %s381_s3 }
 0x19f   : > { %221 = vperm.xlu1 %513, %v146_v50   ;;  %s539_s13 = sshra.s32 %s382_s3, 4  ;;  %s540_s13 = int_to_ptr.hbm [resolvable:$true] %s539_s13 }
 0x1a0   : > { %s541_s5 = scalar_lea.hbm %s540_s13, 16  ;;  %p546_p0 = scmp.lt.s32.totalorder %s540_s13, %s734_s2 }
 0x1a1   : > { %p542_p11 = scmp.ne.s32.totalorder %s540_s13, %s541_s5  ;;  %p547_p1 = scmp.lt.s32.totalorder %s545_s8, %s541_s5 }
 0x1a3   : > { %p543_p12 = pnand %p542_p11, %p656_p5  ;;  %p548_p2 = por %p547_p1, %p546_p0 }
 0x1a5   : > { %213 = vperm.xlu0 %508, %v146_v50   ;;  %168 = vperm.xlu2 %510, %v145_v44   ;;  %p544_p13 = pneg %p543_p12 }
 0x1a7   : > { %516 = vset.pattern.permute.xlu1 %v602_v52  ;;  %p549_p3 = pnand %p548_p2, %p544_p13 }
 0x1a8   : > { %247 = vperm.xlu1 %516, %v146_v50  }
 0x1ad   : > { %515 = vset.pattern.permute.xlu0 %v600_v47  ;;  %512 = vset.pattern.permute.xlu2 %v602_v52 }
 0x1ae   : > { %237 = vperm.xlu0 %515, %v146_v50   ;;  %196 = vperm.xlu2 %512, %v145_v44  }
 0x1b6   : > { %518 = vset.pattern.permute.xlu0 %v598_v40  ;;  %514 = vset.pattern.permute.xlu2 %v601_v51 }
 0x1b7   : > { %227 = vperm.xlu2 %514, %v146_v50  }
 0x1bf   : > { %517 = vset.pattern.permute.xlu2 %v598_v40 }
 0x1d7   : > { %v312_v53 = vpop.permute.xlu2 %311 }
 0x1d8   : > { %v314_v54 = vadd.f32 %v312_v53, %v144_v37 }
 0x1f7   : > { %v334_v57 = vpop.permute.xlu1 %333  ;;  %v345_v59 = vpop.permute.xlu2 %344 }
 0x1ff   : > { %v163_v63 = vpop.permute.xlu1 %162  ;;  %v169_v6 = vpop.permute.xlu2 %168 }
 0x200   : > { %v177_v17 = vmul.f32 %v175_v9, %v169_v6  ;;  %v178_v18 = vmul.f32 %v176_v10, %v169_v6 }
 0x207   : > { %v323_v55 = vpop.permute.xlu0 %322 }
 0x208   : > { %v325_v56 = vadd.f32 %v323_v55, %v314_v54  ;;  %v183_v21 = vpop.permute.xlu1 %182  ;;  %v197_v28 = vpop.permute.xlu2 %196 }
 0x209   : > { %v191_v26 = vmul.f32 %v189_v13, %v183_v21  ;;  %v192_v27 = vmul.f32 %v190_v14, %v183_v21  ;;  %v205_v31 = vmul.f32 %v203_v22, %v197_v28  ;;  %v206_v32 = vmul.f32 %v204_v23, %v197_v28 }
 0x20a   : > { %v336_v58 = vadd.f32 %v334_v57, %v325_v56 }
 0x20c   : > { %v347_v60 = vadd.f32 %v345_v59, %v336_v58 }
 0x20e   : > { %350 = vperm.xlu2 %517, %v347_v60  }
 0x20f   : > { %v150_v5 = vpop.permute.xlu0 %149 }
 0x210   : > { %v159_v11 = vmul.f32 %v157_v3, %v150_v5  ;;  %v160_v12 = vmul.f32 %v158_v4, %v150_v5 }
 0x211   : > { %v222_v39 = vpop.permute.xlu1 %221  ;;  %v228_v44 = vpop.permute.xlu2 %227 }
 0x212   : > { %v165_v19 = vadd.f32 %v163_v63, %v159_v11  ;;  %v166_v20 = vadd.f32 %v163_v63, %v160_v12 }
 0x214   : > { %v179_v24 = vadd.f32 %v177_v17, %v165_v19  ;;  %v180_v25 = vadd.f32 %v178_v18, %v166_v20 }
 0x216   : > { %v193_v29 = vadd.f32 %v191_v26, %v179_v24  ;;  %v194_v30 = vadd.f32 %v192_v27, %v180_v25 }
 0x217   : > { %v214_v36 = vpop.permute.xlu0 %213 }
 0x218   : > { %v207_v33 = vadd.f32 %v205_v31, %v193_v29  ;;  %v208_v34 = vadd.f32 %v206_v32, %v194_v30 }
 0x21a   : > { %v209_v35 = vmax.f32 %v207_v33, 0.0  ;;  %v210_v0 = vmax.f32 %v208_v34, 0.0  ;;  %v248_v58 = vpop.permute.xlu1 %247 }
 0x21c   : > { %v216_v37 = vperm.slane %v209_v35, 0  ;;  %v217_v38 = vperm.slane %v210_v0, 0  ;;  %v230_v42 = vperm.slane %v209_v35, 1  ;;  %v231_v43 = vperm.slane %v210_v0, 1 }
 0x21d   : > { %v240_v45 = vperm.slane %v209_v35, 2  ;;  %v241_v46 = vperm.slane %v210_v0, 2  ;;  %v250_v52 = vperm.slane %v209_v35, 3  ;;  %v251_v53 = vperm.slane %v210_v0, 3 }
 0x21e   : > { %v218_v40 = vmul.f32 %v216_v37, %v214_v36  ;;  %v219_v41 = vmul.f32 %v217_v38, %v214_v36  ;;  %v232_v49 = vmul.f32 %v230_v42, %v228_v44  ;;  %v233_v50 = vmul.f32 %v231_v43, %v228_v44 }
 0x21f   : > { %v252_v61 = vmul.f32 %v250_v52, %v248_v58  ;;  %v253_v62 = vmul.f32 %v251_v53, %v248_v58 }
 0x220   : > { %v224_v47 = vadd.f32 %v222_v39, %v218_v40  ;;  %v225_v48 = vadd.f32 %v222_v39, %v219_v41  ;;  %v238_v51 = vpop.permute.xlu0 %237 }
 0x221   : > { %v242_v56 = vmul.f32 %v240_v45, %v238_v51  ;;  %v243_v57 = vmul.f32 %v241_v46, %v238_v51 }
 0x222   : > { %v234_v54 = vadd.f32 %v232_v49, %v224_v47  ;;  %v235_v55 = vadd.f32 %v233_v50, %v225_v48 }
 0x224   : > { %v244_v59 = vadd.f32 %v242_v56, %v234_v54  ;;  %v245_v60 = vadd.f32 %v243_v57, %v235_v55 }
 0x226   : > { %v254_v63 = vadd.f32 %v252_v61, %v244_v59  ;;  %v255_v1 = vadd.f32 %v253_v62, %v245_v60 }
 0x268   : > { %v351_v2 = vpop.permute.xlu2 %350 }
 0x269   : > { %v353_v3 = vadd.f32 %v351_v2, %v254_v63  ;;  %v354_v4 = vadd.f32 %v351_v2, %v255_v1 }
 0x26b   : > { %v355_v5 = vmul.f32 0.5, %v353_v3  ;;  %v356_v6 = vmul.f32 0.5, %v354_v4 }
 0x26d   : > { %521 = vtanh.f32 %v355_v5 }
 0x26e   : > { %523 = vtanh.f32 %v356_v6 }
 0x273   : > { %v522_v7 = vpop.eup %521 }
 0x274   : > { %v524_v8 = vpop.eup %523  ;;  %v359_v9 = vmul.f32 0.5, %v522_v7 }
 0x275   : > { %v360_v10 = vmul.f32 0.5, %v524_v8 }
 0x276   : > { %v361_v11 = vadd.f32 0.5, %v359_v9 }
 0x277   : > { %v362_v12 = vadd.f32 0.5, %v360_v10 }
 0x278   : > { %363 = vst [vmem:[%s136_s29] sm:$0xff] %v361_v11 }
 0x279   : > { %364 = vst [vmem:[%s136_s29 + $0x8] sm:$0xff] %v362_v12 }
 0x27a   : > { %552 = shalt.err (!%p549_p3)
}
 0x27b   : > { %455 = dma.vmem_to_hbm [thread:$0]  (%p656_p5), %s380_s30, 256, %s382_s3, %s366_s4  }
 0x27c PF: > { %p461_p4 = scmp.ge.s32.totalorder %s587_s12, 2  ;;  %s393_s17 = sand.u32 1, %s575_s9  }
 0x27d   : > { %s394_s21 = scalar_lea.sflag [#allocation3], %s393_s17 }
 0x27e   : > { %p458_p7 = pnand %p461_p4, %p660_p6 }
 0x280   : > { %p459_p8 = pneg %p458_p7 }
 0x282   : > { %570 = dma.done.wait (%p459_p8), %s394_s21, 256  }
 0x283   : > { %572 = vsyncadd (%p459_p8), %s394_s21, 4294967040  ;;  %p12_p9 = scmp.ge.s32.totalorder %s643_s15, 4   ;;  %s737_s9 = smov %s579_s10 }
 0x284   : > { %s738_s10 = smov %s583_s11  ;;  %s739_s11 = smov %s654_s18 }
 0x285   : > { %s740_s12 = smov %s643_s15  ;;  %14 = sbr.rel (!%p12_p9) target bundleno = 3 (0x3), region = 63 }
 0x28a   :  { %400 = vsyncpa [#allocation3], 1 }
 0x28b   :  { %402 = vsyncpa [#allocation3 + $0x1], 1 }

</bundles_post_ra>
